<compile_context>
chip_gen: v7x
topology: tpu7x:2x2x1
jax: 0.10.0
libtpu: 0.0.40
codegen_flags: <defaults>
</compile_context>

<pallas_src>
import functools

import jax
import jax.numpy as jnp
import numpy as np
from jax.experimental import pallas as pl
from jax.experimental.pallas import tpu as pltpu


# ------------------------------ Pallas kernel ------------------------------ #
def _fused_chebnet_kernel(lap_ref, x_ref, w1_ref, b1_ref, w2_ref, b2_ref, out_ref,
                          *scratch, K: int, cin_p: int, hid_p: int,
                          col_tile: int, resident: bool):
    """Fused 2-layer ChebNet forward, channel-major (lane-dense) layout.

    Grid: (s, j) with s = 2*(K-1) Chebyshev recursion steps (layer 1 then layer 2)
    and j = N_pad / col_tile Laplacian column tiles.

    resident=True : lap_ref is a raw (ANY/HBM) ref of the full [N_p, N_p] L_hat^T,
                    copied once into a single-buffered VMEM scratch at s == 0.
    resident=False: lap_ref is a streamed [N_p, col_tile] VMEM block (bf16).

    x_ref:   [Cin_p, N_p]      x^T                     (compute dtype)
    w1_ref:  [Hid_p, K*Cin_p]  layer-1 filters (k,c flattened)
    b1_ref:  [Hid_p, 1]        f32
    w2_ref:  [Cout_p, K*Hid_p]
    b2_ref:  [Cout_p, 1]       f32
    out_ref: [Cout_p, N_p]     logits^T (f32), written tile-by-tile
    scratch: resident -> (lap_vmem, copy_sem, tx1, tx2); streaming -> (tx1, tx2)
    tx1/tx2: stacked Chebyshev state T_0..T_{K-1} per layer, compute dtype.
    """
    if resident:
        lap_vmem, copy_sem, tx1_ref, tx2_ref = scratch
    else:
        lap_vmem = lap_ref
        tx1_ref, tx2_ref = scratch

    s = pl.program_id(0)
    j = pl.program_id(1)
    n_steps1 = K - 1  # recursion steps per layer (K >= 2)

    if resident:
        col_idx = slice(None)          # single column tile == whole row

        @pl.when(s == 0)               # j is always 0 when resident
        def _fetch_lap():
            cp = pltpu.make_async_copy(lap_ref, lap_vmem, copy_sem)
            cp.start()
            cp.wait()
    else:
        col_idx = pl.ds(pl.multiple_of(j * col_tile, 128), col_tile)

    # Seed layer-1 state with T_0^T = x^T, once, at the first grid step.
    @pl.when((s == 0) & (j == 0))
    def _seed():
        tx1_ref[0:cin_p, :] = x_ref[...]

    def cheb_step(tx_ref, c_p, k):
        """T_k^T[:, tile] = (2 if k>=2 else 1)*T_{k-1}^T @ L^T[:, tile] - T_{k-2}^T[:, tile]."""
        prev = tx_ref[(k - 1) * c_p:k * c_p, :]                  # [c_p, N_p], compute dtype
        acc = jnp.dot(prev, lap_vmem[...],                       # MXU, f32 accumulation
                      preferred_element_type=jnp.float32)        # [c_p, col_tile] f32
        if k >= 2:
            acc = 2.0 * acc - tx_ref[(k - 2) * c_p:(k - 1) * c_p, col_idx].astype(jnp.float32)
        tx_ref[k * c_p:(k + 1) * c_p, col_idx] = acc.astype(tx_ref.dtype)

    # ---- layer-1 Chebyshev recursion (static unroll over the step index) ----
    for ss in range(n_steps1):
        @pl.when(s == ss)
        def _(ss=ss):
            cheb_step(tx1_ref, cin_p, ss + 1)

    # ---- layer-1 projection + bias + ReLU, tiled over j (overlaps streaming) ----
    @pl.when(s == n_steps1 - 1)
    def _project1():
        h = jnp.dot(w1_ref[...], tx1_ref[:, col_idx],
                    preferred_element_type=jnp.float32) + b1_ref[...]
        # Fused ReLU; F.dropout(training=False) is the identity.
        tx2_ref[0:hid_p, col_idx] = jnp.maximum(h, 0.0).astype(tx2_ref.dtype)

    # ---- layer-2 Chebyshev recursion ----
    for ss in range(n_steps1):
        @pl.when(s == n_steps1 + ss)
        def _(ss=ss):
            cheb_step(tx2_ref, hid_p, ss + 1)

    # ---- layer-2 projection + bias -> logits, tiled over j ----
    @pl.when(s == 2 * n_steps1 - 1)
    def _project2():
        logits = jnp.dot(w2_ref[...], tx2_ref[:, col_idx],
                         preferred_element_type=jnp.float32) + b2_ref[...]
        out_ref[:, col_idx] = logits.astype(out_ref.dtype)


# ------------------------------- JAX glue ---------------------------------- #
def _round_up(x: int, m: int) -> int:
    return (x + m - 1) // m * m


def _tpu_vmem_capacity_bytes() -> int:
    try:
        return int(pltpu.get_tpu_info().vmem_capacity_bytes)   # 128 MiB v5e/v6e, 64 MiB v7x
    except Exception:
        return 64 << 20                                        # conservative fallback


def scaled_laplacian(edge_index, edge_weight, num_nodes, lambda_max=None,
                     *, transpose=False):
    """Dense L_hat = 2*L_sym/lambda_max - I (or its transpose), as in PyG ChebConv."""
    row, col = edge_index[0], edge_index[1]
    if edge_weight is None:
        edge_weight = jnp.ones((row.shape[0],), dtype=jnp.float32)
    nonloop = row != col                                  # remove_self_loops
    ew = jnp.where(nonloop, edge_weight.astype(jnp.float32), 0.0)

    # sym-normalized Laplacian  L = I - D^{-1/2} A D^{-1/2}
    deg = jnp.zeros((num_nodes,), jnp.float32).at[row].add(ew)
    dis = jnp.where(deg > 0.0, jax.lax.rsqrt(deg), 0.0)
    lap_off = -dis[row] * ew * dis[col]                   # off-diagonal weights (<= 0)

    if lambda_max is None:
        # Behavioral assumption (matches PyG default for normalization='sym'):
        # the "estimated" largest eigenvalue of the sym-normalized Laplacian is 2.0.
        lambda_max = 2.0
    lambda_max = jnp.asarray(lambda_max, jnp.float32)
    scale = 2.0 / lambda_max

    r, c = (col, row) if transpose else (row, col)
    off = jnp.zeros((num_nodes, num_nodes), jnp.float32).at[r, c].add(scale * lap_off)
    diag = (scale - 1.0) * jnp.eye(num_nodes, dtype=jnp.float32)
    return off + diag


def glorot(key, shape):
    fan_in, fan_out = shape[-2], shape[-1]
    a = (6.0 / (fan_in + fan_out)) ** 0.5
    return jax.random.uniform(key, shape, jnp.float32, -a, a)


def init_chebnet_params(key, in_c, hid_c, out_c, K):
    k1, k2 = jax.random.split(key)
    return {
        "w1": glorot(k1, (K, in_c, hid_c)),
        "b1": jnp.zeros((hid_c,), jnp.float32),
        "w2": glorot(k2, (K, hid_c, out_c)),
        "b2": jnp.zeros((out_c,), jnp.float32),
    }


@functools.partial(jax.jit, static_argnames=("use_bf16_lap", "lap_budget_bytes"))
def chebnet_forward(params, x, edge_index, edge_weight=None, lambda_max=None,
                    *, use_bf16_lap=False, lap_budget_bytes=None):
    """Eval-mode ChebNet forward (ChebConv -> ReLU -> [dropout=id] -> ChebConv).

    `lap_budget_bytes` is a testing hook that overrides the VMEM budget reserved
    for the Laplacian (forces the streaming path when set small).
    """
    n, cin = x.shape
    k_order, _, hid = params["w1"].shape
    cout = params["w2"].shape[-1]
    if k_order < 2:
        raise NotImplementedError("K >= 2 required")  # TODO(synk): trivial K=1 path

    cin_p, hid_p, cout_p = (_round_up(c, 8) for c in (cin, hid, cout))
    n_p128 = _round_up(n, 128)
    f32 = 4

    # ---- generation-aware VMEM budget for keeping L resident ------------------
    vmem_cap = _tpu_vmem_capacity_bytes()
    small_io_f32 = 2 * f32 * (cin_p * n_p128 + hid_p * k_order * cin_p + hid_p
                              + cout_p * k_order * hid_p + cout_p + cout_p * n_p128)
    scratch_f32 = f32 * k_order * (cin_p + hid_p) * n_p128
    overhead = small_io_f32 + scratch_f32 + (6 << 20)
    if lap_budget_bytes is None:
        lap_budget = max(vmem_cap - overhead, 8 << 20)
    else:
        lap_budget = int(lap_budget_bytes)

    # ---- residency / dtype / tiling decision ----------------------------------
    # L is single-buffered when resident (manual copy), so no factor-2 here.
    if (not use_bf16_lap) and n_p128 * n_p128 * 4 <= lap_budget:
        resident, lap_dtype = True, jnp.float32      # exact f32 path
    elif n_p128 * n_p128 * 2 <= lap_budget:
        resident, lap_dtype = True, jnp.bfloat16     # bf16-resident beats any streaming
    else:
        resident, lap_dtype = False, jnp.bfloat16    # streaming => HBM-bound => force bf16

    itemsize = 2 if lap_dtype == jnp.bfloat16 else 4
    if resident:
        n_p, col_tile = n_p128, n_p128
    else:
        n_p = _round_up(n, 512)        # keep streamed tiles >= 512 lanes wide when possible
        col_tile = 128
        for cand in (2048, 1024, 512, 256):
            if n_p % cand == 0 and 3 * n_p * cand * itemsize <= lap_budget:
                col_tile = cand
                break
    n_j = n_p // col_tile

    # Kernel consumes L_hat^T so the channel-major recursion Tx^T @ L^T is exact
    # for arbitrary (possibly asymmetric) edge lists; identical for undirected graphs.
    lap = scaled_laplacian(edge_index, edge_weight, n, lambda_max, transpose=True)

    # Padded, channel-major layouts: nodes on the lane axis (128), channels on sublanes (8).
    lap_p = jnp.zeros((n_p, n_p), jnp.float32).at[:n, :n].set(lap).astype(lap_dtype)
    x_t = jnp.zeros((cin_p, n_p), jnp.float32).at[:cin, :n].set(
        x.astype(jnp.float32).T).astype(lap_dtype)

    # Flatten the K filters so each layer's projection is ONE matmul with a
    # (K*C)-deep contraction:  W_flat[o, k*C_p + c] = W[k, c, o].
    w1_p = jnp.zeros((k_order, cin_p, hid_p), jnp.float32).at[:, :cin, :hid].set(
        params["w1"].astype(jnp.float32))
    w1_f = jnp.transpose(w1_p, (2, 0, 1)).reshape(hid_p, k_order * cin_p).astype(lap_dtype)
    b1_c = jnp.zeros((hid_p, 1), jnp.float32).at[:hid, 0].set(params["b1"])

    w2_p = jnp.zeros((k_order, hid_p, cout_p), jnp.float32).at[:, :hid, :cout].set(
        params["w2"].astype(jnp.float32))
    w2_f = jnp.transpose(w2_p, (2, 0, 1)).reshape(cout_p, k_order * hid_p).astype(lap_dtype)
    b2_c = jnp.zeros((cout_p, 1), jnp.float32).at[:cout, 0].set(params["b2"])

    s_steps = 2 * (k_order - 1)
    grid = (s_steps, n_j)

    # TODO(synk): 2-band ring-buffer state + incremental W_k @ T_k accumulation would
    # shrink scratch further for large K/hid on v7x; K bands are fine at these widths.
    tx_scratch = [pltpu.VMEM((k_order * cin_p, n_p), lap_dtype),
                  pltpu.VMEM((k_order * hid_p, n_p), lap_dtype)]
    if resident:
        # Raw HBM ref; copied once into a single-buffered VMEM scratch inside the kernel.
        lap_spec = pl.BlockSpec(memory_space=pl.ANY)
        scratch_shapes = [pltpu.VMEM((n_p, n_p), lap_dtype),
                          pltpu.SemaphoreType.DMA(())] + tx_scratch
        lap_window = n_p * n_p * itemsize
    else:
        # Streamed column blocks, 3-deep pipelining to hide the j-wrap DMA restart.
        lap_spec = pl.BlockSpec((n_p, col_tile), lambda s, j: (0, j),
                                pipeline_mode=pl.Buffered(3))
        scratch_shapes = list(tx_scratch)
        lap_window = 3 * n_p * col_tile * itemsize

    # VMEM accounting -> scoped limit (headroom below physical capacity).
    small_io = 2 * (itemsize * (cin_p * n_p + w1_f.size + w2_f.size)
                    + f32 * (hid_p + cout_p + cout_p * n_p))
    scratch_bytes = itemsize * k_order * (cin_p + hid_p) * n_p
    vmem_limit = int(min(max(lap_window + small_io + scratch_bytes + (4 << 20), 32 << 20),
                         vmem_cap - (2 << 20)))

    # Advisory cost estimate for XLA's scheduler.
    lap_passes = 1 if resident else s_steps
    flops = int(2 * (k_order - 1) * (cin_p + hid_p) * n_p * n_p
                + 2 * n_p * (hid_p * k_order * cin_p + cout_p * k_order * hid_p))
    bytes_accessed = int(n_p * n_p * itemsize * lap_passes
                         + itemsize * (cin_p * n_p + w1_f.size + w2_f.size)
                         + f32 * (hid_p + cout_p + cout_p * n_p))

    kernel = functools.partial(_fused_chebnet_kernel, K=k_order, cin_p=cin_p,
                               hid_p=hid_p, col_tile=col_tile, resident=resident)

    out_t = pl.pallas_call(
        kernel,
        out_shape=jax.ShapeDtypeStruct((cout_p, n_p), jnp.float32),
        grid_spec=pltpu.PrefetchScalarGridSpec(
            num_scalar_prefetch=0,
            grid=grid,
            in_specs=[
                lap_spec,                                              # L^T (resident/streamed)
                pl.BlockSpec((cin_p, n_p), lambda s, j: (0, 0)),       # resident x^T
                pl.BlockSpec((hid_p, k_order * cin_p), lambda s, j: (0, 0)),
                pl.BlockSpec((hid_p, 1), lambda s, j: (0, 0)),
                pl.BlockSpec((cout_p, k_order * hid_p), lambda s, j: (0, 0)),
                pl.BlockSpec((cout_p, 1), lambda s, j: (0, 0)),
            ],
            out_specs=pl.BlockSpec((cout_p, n_p), lambda s, j: (0, 0)),
            scratch_shapes=scratch_shapes,
        ),
        # Both axes carry Chebyshev state in scratch -> sequential ("arbitrary").
        compiler_params=pltpu.CompilerParams(
            dimension_semantics=("arbitrary", "arbitrary"),
            vmem_limit_bytes=vmem_limit,
        ),
        cost_estimate=pl.CostEstimate(flops=flops, transcendentals=0,
                                      bytes_accessed=bytes_accessed),
    )(lap_p, x_t, w1_f, b1_c, w2_f, b2_c)

    return out_t[:cout, :n].T   # back to node-major [num_nodes, out_channels]


# ---------------- Pure-JAX reference (node-major math, for checks) ---------- #
def _ref_chebconv(lap, x, w, b):
    K = w.shape[0]
    tx0, out = x, x @ w[0]
    if K > 1:
        tx1 = lap @ x
        out = out + tx1 @ w[1]
        for k in range(2, K):
            tx2 = 2.0 * (lap @ tx1) - tx0
            out = out + tx2 @ w[k]
            tx0, tx1 = tx1, tx2
    return out + b


def _ref_forward(params, x, edge_index):
    lap = scaled_laplacian(edge_index, None, x.shape[0], None)
    h = jnp.maximum(_ref_chebconv(lap, x, params["w1"], params["b1"]), 0.0)
    return _ref_chebconv(lap, h, params["w2"], params["b2"])


if __name__ == "__main__":
    IN_C, HID_C, OUT_C, K = 8, 16, 4, 3

    def ring_graph(n):
        src = np.arange(n)
        dst = (src + 1) % n
        return jnp.asarray(np.stack([np.concatenate([src, dst]),
                                     np.concatenate([dst, src])]), dtype=jnp.int32)

    key = jax.random.PRNGKey(0)
    kx1, kx2, kp = jax.random.split(key, 3)
    params = init_chebnet_params(kp, IN_C, HID_C, OUT_C, K)

    # 1) Small graph -> resident f32 Laplacian path: exact check vs. reference.
    N1 = 16
    x1 = jax.random.normal(kx1, (N1, IN_C), dtype=jnp.float32)
    ei1 = ring_graph(N1)
    out1 = jax.block_until_ready(chebnet_forward(params, x1, ei1))
    ref1 = _ref_forward(params, x1, ei1)
    np.testing.assert_allclose(np.asarray(out1), np.asarray(ref1), rtol=1e-5, atol=1e-5)
    assert out1.shape == (N1, OUT_C)

    # 2) Resident bf16 Laplacian + bf16 Chebyshev state: loose sanity check.
    out1_bf16 = jax.block_until_ready(
        chebnet_forward(params, x1, ei1, use_bf16_lap=True))
    np.testing.assert_allclose(np.asarray(out1_bf16), np.asarray(ref1),
                               rtol=1e-1, atol=2e-1)

    # 3) Larger graph with an artificially tiny L budget: exercises the streaming
    #    path (forced bf16, column-tiled, Buffered(3), per-tile projections).
    N2 = 600
    x2 = jax.random.normal(kx2, (N2, IN_C), dtype=jnp.float32)
    ei2 = ring_graph(N2)
    out2 = jax.block_until_ready(
        chebnet_forward(params, x2, ei2, lap_budget_bytes=1 << 19))
    ref2 = _ref_forward(params, x2, ei2)
    np.testing.assert_allclose(np.asarray(out2), np.asarray(ref2),
                               rtol=1e-1, atol=2e-1)
    assert out2.shape == (N2, OUT_C)

    print("KERNEL_OK")
</pallas_src>

<mosaic_0001>
module attributes {stable_mosaic.version = 11 : i64} {
  func.func private @main(%arg0: i32) attributes {dimension_semantics = [#tpu.dimension_semantics<core_parallel>], iteration_bounds = array<i64: 2>, tpu.core_type = #tpu.core_type<sc_scalar_subcore>, window_params = []} {
    return
  }
}

module attributes {stable_mosaic.version = 11 : i64} {
  func.func private @main(%arg0: i32) attributes {dimension_semantics = [#tpu.dimension_semantics<core_parallel>], iteration_bounds = array<i64: 2>, tpu.core_type = #tpu.core_type<sc_scalar_subcore>, window_params = []} {
    return
  }
}

module attributes {stable_mosaic.version = 11 : i64} {
  func.func @_fused_chebnet_kernel(%arg0: i32, %arg1: i32, %arg2: memref<128x128xf32, #tpu.memory_space<any>>, %arg3: memref<8x128xf32, #tpu.memory_space<vmem>>, %arg4: memref<16x24xf32, #tpu.memory_space<vmem>>, %arg5: memref<16x1xf32, #tpu.memory_space<vmem>>, %arg6: memref<8x48xf32, #tpu.memory_space<vmem>>, %arg7: memref<8x1xf32, #tpu.memory_space<vmem>>, %arg8: memref<8x128xf32, #tpu.memory_space<vmem>>, %arg9: memref<128x128xf32, #tpu.memory_space<vmem>>, %arg10: memref<!tpu.dma_semaphore, #tpu.memory_space<semaphore_mem>>, %arg11: memref<24x128xf32, #tpu.memory_space<vmem>>, %arg12: memref<48x128xf32, #tpu.memory_space<vmem>>) attributes {dimension_semantics = [#tpu.dimension_semantics<arbitrary>, #tpu.dimension_semantics<arbitrary>], iteration_bounds = array<i64: 4, 1>, scalar_prefetch = 0 : i64, scratch_operands = 4 : i64, tpu.core_type = #tpu.core_type<tc>, window_params = [{}, {pipeline_mode = #tpu.pipeline_mode<synchronous>, transform_indices = @transform_1, window_bounds = array<i64: 8, 128>}, {pipeline_mode = #tpu.pipeline_mode<synchronous>, transform_indices = @transform_2, window_bounds = array<i64: 16, 24>}, {pipeline_mode = #tpu.pipeline_mode<synchronous>, transform_indices = @transform_3, window_bounds = array<i64: 16, 1>}, {pipeline_mode = #tpu.pipeline_mode<synchronous>, transform_indices = @transform_4, window_bounds = array<i64: 8, 48>}, {pipeline_mode = #tpu.pipeline_mode<synchronous>, transform_indices = @transform_5, window_bounds = array<i64: 8, 1>}, {pipeline_mode = #tpu.pipeline_mode<synchronous>, transform_indices = @transform_6, window_bounds = array<i64: 8, 128>}]} {
    %c0_i32 = arith.constant 0 : i32
    %0 = arith.cmpi eq, %arg0, %c0_i32 : i32
    %1 = arith.extui %0 : i1 to i32
    %c0_i32_0 = arith.constant 0 : i32
    %2 = arith.cmpi ne, %1, %c0_i32_0 : i32
    scf.if %2 {
      tpu.enqueue_dma source(%arg2 : memref<128x128xf32, #tpu.memory_space<any>>) target(%arg9 : memref<128x128xf32, #tpu.memory_space<vmem>>) target_semaphore(%arg10 : memref<!tpu.dma_semaphore, #tpu.memory_space<semaphore_mem>>)
      tpu.wait_dma2 semaphore(%arg10 : memref<!tpu.dma_semaphore, #tpu.memory_space<semaphore_mem>>) src(%arg2 : memref<128x128xf32, #tpu.memory_space<any>>) dst(%arg9 : memref<128x128xf32, #tpu.memory_space<vmem>>)
    } else {
    }
    %c0_i32_1 = arith.constant 0 : i32
    %3 = arith.cmpi eq, %arg0, %c0_i32_1 : i32
    %c0_i32_2 = arith.constant 0 : i32
    %4 = arith.cmpi eq, %arg1, %c0_i32_2 : i32
    %5 = arith.andi %3, %4 : i1
    %6 = arith.extui %5 : i1 to i32
    %c0_i32_3 = arith.constant 0 : i32
    %7 = arith.cmpi ne, %6, %c0_i32_3 : i32
    scf.if %7 {
      %c0 = arith.constant 0 : index
      %c0_13 = arith.constant 0 : index
      %26 = vector.load %arg3[%c0, %c0_13] : memref<8x128xf32, #tpu.memory_space<vmem>>, vector<8x128xf32>
      %c0_14 = arith.constant 0 : index
      %c0_15 = arith.constant 0 : index
      %27 = vector.load %arg11[%c0_14, %c0_15] : memref<24x128xf32, #tpu.memory_space<vmem>>, vector<8x128xf32>
      tpu.vector_store %arg11[%c0_14, %c0_15], %26 {strides = array<i32>} : memref<24x128xf32, #tpu.memory_space<vmem>>, vector<8x128xf32>,
    } else {
    }
    %c0_i32_4 = arith.constant 0 : i32
    %8 = arith.cmpi eq, %arg0, %c0_i32_4 : i32
    %9 = arith.extui %8 : i1 to i32
    %c0_i32_5 = arith.constant 0 : i32
    %10 = arith.cmpi ne, %9, %c0_i32_5 : i32
    scf.if %10 {
      %c0 = arith.constant 0 : index
      %c0_13 = arith.constant 0 : index
      %26 = vector.load %arg11[%c0, %c0_13] : memref<24x128xf32, #tpu.memory_space<vmem>>, vector<8x128xf32>
      %c0_14 = arith.constant 0 : index
      %c0_15 = arith.constant 0 : index
      %27 = vector.load %arg9[%c0_14, %c0_15] : memref<128x128xf32, #tpu.memory_space<vmem>>, vector<128x128xf32>
      %cst = arith.constant dense<0.000000e+00> : vector<8x128xf32>
      %28 = tpu.matmul %26, %27, %cst {dimension_numbers = #tpu.dot_dimension_numbers<[1], [0], [0], [1], [0, 0, 1, 1], [], []>} : vector<8x128xf32>, vector<128x128xf32>, vector<8x128xf32> -> vector<8x128xf32>
      %c8 = arith.constant 8 : index
      %c0_16 = arith.constant 0 : index
      %29 = vector.load %arg11[%c8, %c0_16] : memref<24x128xf32, #tpu.memory_space<vmem>>, vector<8x128xf32>
      tpu.vector_store %arg11[%c8, %c0_16], %28 {strides = array<i32>} : memref<24x128xf32, #tpu.memory_space<vmem>>, vector<8x128xf32>,
    } else {
    }
    %c1_i32 = arith.constant 1 : i32
    %11 = arith.cmpi eq, %arg0, %c1_i32 : i32
    %12 = arith.extui %11 : i1 to i32
    %c0_i32_6 = arith.constant 0 : i32
    %13 = arith.cmpi ne, %12, %c0_i32_6 : i32
    scf.if %13 {
      %c8 = arith.constant 8 : index
      %c0 = arith.constant 0 : index
      %26 = vector.load %arg11[%c8, %c0] : memref<24x128xf32, #tpu.memory_space<vmem>>, vector<8x128xf32>
      %c0_13 = arith.constant 0 : index
      %c0_14 = arith.constant 0 : index
      %27 = vector.load %arg9[%c0_13, %c0_14] : memref<128x128xf32, #tpu.memory_space<vmem>>, vector<128x128xf32>
      %cst = arith.constant dense<0.000000e+00> : vector<8x128xf32>
      %28 = tpu.matmul %26, %27, %cst {dimension_numbers = #tpu.dot_dimension_numbers<[1], [0], [0], [1], [0, 0, 1, 1], [], []>} : vector<8x128xf32>, vector<128x128xf32>, vector<8x128xf32> -> vector<8x128xf32>
      %cst_15 = arith.constant 2.000000e+00 : f32
      %29 = vector.broadcast %cst_15 : f32 to vector<8x128xf32>
      %30 = arith.mulf %29, %28 : vector<8x128xf32>
      %c0_16 = arith.constant 0 : index
      %c0_17 = arith.constant 0 : index
      %31 = vector.load %arg11[%c0_16, %c0_17] : memref<24x128xf32, #tpu.memory_space<vmem>>, vector<8x128xf32>
      %32 = arith.subf %30, %31 : vector<8x128xf32>
      %c16 = arith.constant 16 : index
      %c0_18 = arith.constant 0 : index
      %33 = vector.load %arg11[%c16, %c0_18] : memref<24x128xf32, #tpu.memory_space<vmem>>, vector<8x128xf32>
      tpu.vector_store %arg11[%c16, %c0_18], %32 {strides = array<i32>} : memref<24x128xf32, #tpu.memory_space<vmem>>, vector<8x128xf32>,
    } else {
    }
    %c1_i32_7 = arith.constant 1 : i32
    %14 = arith.cmpi eq, %arg0, %c1_i32_7 : i32
    %15 = arith.extui %14 : i1 to i32
    %c0_i32_8 = arith.constant 0 : i32
    %16 = arith.cmpi ne, %15, %c0_i32_8 : i32
    scf.if %16 {
      %c0 = arith.constant 0 : index
      %c0_13 = arith.constant 0 : index
      %26 = vector.load %arg4[%c0, %c0_13] : memref<16x24xf32, #tpu.memory_space<vmem>>, vector<16x24xf32>
      %c0_14 = arith.constant 0 : index
      %c0_15 = arith.constant 0 : index
      %27 = vector.load %arg11[%c0_14, %c0_15] : memref<24x128xf32, #tpu.memory_space<vmem>>, vector<24x128xf32>
      %cst = arith.constant dense<0.000000e+00> : vector<16x128xf32>
      %28 = tpu.matmul %26, %27, %cst {dimension_numbers = #tpu.dot_dimension_numbers<[1], [0], [0], [1], [0, 0, 1, 1], [], []>} : vector<16x24xf32>, vector<24x128xf32>, vector<16x128xf32> -> vector<16x128xf32>
      %c0_16 = arith.constant 0 : index
      %c0_17 = arith.constant 0 : index
      %29 = vector.load %arg5[%c0_16, %c0_17] : memref<16x1xf32, #tpu.memory_space<vmem>>, vector<16x1xf32>
      %30 = vector.broadcast %29 : vector<16x1xf32> to vector<16x128xf32>
      %31 = arith.addf %28, %30 : vector<16x128xf32>
      %cst_18 = arith.constant 0.000000e+00 : f32
      %32 = vector.broadcast %cst_18 : f32 to vector<16x128xf32>
      %33 = arith.maximumf %31, %32 : vector<16x128xf32>
      %c0_19 = arith.constant 0 : index
      %c0_20 = arith.constant 0 : index
      %34 = vector.load %arg12[%c0_19, %c0_20] : memref<48x128xf32, #tpu.memory_space<vmem>>, vector<16x128xf32>
      tpu.vector_store %arg12[%c0_19, %c0_20], %33 {strides = array<i32>} : memref<48x128xf32, #tpu.memory_space<vmem>>, vector<16x128xf32>,
    } else {
    }
    %c2_i32 = arith.constant 2 : i32
    %17 = arith.cmpi eq, %arg0, %c2_i32 : i32
    %18 = arith.extui %17 : i1 to i32
    %c0_i32_9 = arith.constant 0 : i32
    %19 = arith.cmpi ne, %18, %c0_i32_9 : i32
    scf.if %19 {
      %c0 = arith.constant 0 : index
      %c0_13 = arith.constant 0 : index
      %26 = vector.load %arg12[%c0, %c0_13] : memref<48x128xf32, #tpu.memory_space<vmem>>, vector<16x128xf32>
      %c0_14 = arith.constant 0 : index
      %c0_15 = arith.constant 0 : index
      %27 = vector.load %arg9[%c0_14, %c0_15] : memref<128x128xf32, #tpu.memory_space<vmem>>, vector<128x128xf32>
      %cst = arith.constant dense<0.000000e+00> : vector<16x128xf32>
      %28 = tpu.matmul %26, %27, %cst {dimension_numbers = #tpu.dot_dimension_numbers<[1], [0], [0], [1], [0, 0, 1, 1], [], []>} : vector<16x128xf32>, vector<128x128xf32>, vector<16x128xf32> -> vector<16x128xf32>
      %c16 = arith.constant 16 : index
      %c0_16 = arith.constant 0 : index
      %29 = vector.load %arg12[%c16, %c0_16] : memref<48x128xf32, #tpu.memory_space<vmem>>, vector<16x128xf32>
      tpu.vector_store %arg12[%c16, %c0_16], %28 {strides = array<i32>} : memref<48x128xf32, #tpu.memory_space<vmem>>, vector<16x128xf32>,
    } else {
    }
    %c3_i32 = arith.constant 3 : i32
    %20 = arith.cmpi eq, %arg0, %c3_i32 : i32
    %21 = arith.extui %20 : i1 to i32
    %c0_i32_10 = arith.constant 0 : i32
    %22 = arith.cmpi ne, %21, %c0_i32_10 : i32
    scf.if %22 {
      %c16 = arith.constant 16 : index
      %c0 = arith.constant 0 : index
      %26 = vector.load %arg12[%c16, %c0] : memref<48x128xf32, #tpu.memory_space<vmem>>, vector<16x128xf32>
      %c0_13 = arith.constant 0 : index
      %c0_14 = arith.constant 0 : index
      %27 = vector.load %arg9[%c0_13, %c0_14] : memref<128x128xf32, #tpu.memory_space<vmem>>, vector<128x128xf32>
      %cst = arith.constant dense<0.000000e+00> : vector<16x128xf32>
      %28 = tpu.matmul %26, %27, %cst {dimension_numbers = #tpu.dot_dimension_numbers<[1], [0], [0], [1], [0, 0, 1, 1], [], []>} : vector<16x128xf32>, vector<128x128xf32>, vector<16x128xf32> -> vector<16x128xf32>
      %cst_15 = arith.constant 2.000000e+00 : f32
      %29 = vector.broadcast %cst_15 : f32 to vector<16x128xf32>
      %30 = arith.mulf %29, %28 : vector<16x128xf32>
      %c0_16 = arith.constant 0 : index
      %c0_17 = arith.constant 0 : index
      %31 = vector.load %arg12[%c0_16, %c0_17] : memref<48x128xf32, #tpu.memory_space<vmem>>, vector<16x128xf32>
      %32 = arith.subf %30, %31 : vector<16x128xf32>
      %c32 = arith.constant 32 : index
      %c0_18 = arith.constant 0 : index
      %33 = vector.load %arg12[%c32, %c0_18] : memref<48x128xf32, #tpu.memory_space<vmem>>, vector<16x128xf32>
      tpu.vector_store %arg12[%c32, %c0_18], %32 {strides = array<i32>} : memref<48x128xf32, #tpu.memory_space<vmem>>, vector<16x128xf32>,
    } else {
    }
    %c3_i32_11 = arith.constant 3 : i32
    %23 = arith.cmpi eq, %arg0, %c3_i32_11 : i32
    %24 = arith.extui %23 : i1 to i32
    %c0_i32_12 = arith.constant 0 : i32
    %25 = arith.cmpi ne, %24, %c0_i32_12 : i32
    scf.if %25 {
      %c0 = arith.constant 0 : index
      %c0_13 = arith.constant 0 : index
      %26 = vector.load %arg6[%c0, %c0_13] : memref<8x48xf32, #tpu.memory_space<vmem>>, vector<8x48xf32>
      %c0_14 = arith.constant 0 : index
      %c0_15 = arith.constant 0 : index
      %27 = vector.load %arg12[%c0_14, %c0_15] : memref<48x128xf32, #tpu.memory_space<vmem>>, vector<48x128xf32>
      %cst = arith.constant dense<0.000000e+00> : vector<8x128xf32>
      %28 = tpu.matmul %26, %27, %cst {dimension_numbers = #tpu.dot_dimension_numbers<[1], [0], [0], [1], [0, 0, 1, 1], [], []>} : vector<8x48xf32>, vector<48x128xf32>, vector<8x128xf32> -> vector<8x128xf32>
      %c0_16 = arith.constant 0 : index
      %c0_17 = arith.constant 0 : index
      %29 = vector.load %arg7[%c0_16, %c0_17] : memref<8x1xf32, #tpu.memory_space<vmem>>, vector<8x1xf32>
      %30 = vector.broadcast %29 : vector<8x1xf32> to vector<8x128xf32>
      %31 = arith.addf %28, %30 : vector<8x128xf32>
      %c0_18 = arith.constant 0 : index
      %c0_19 = arith.constant 0 : index
      %32 = vector.load %arg8[%c0_18, %c0_19] : memref<8x128xf32, #tpu.memory_space<vmem>>, vector<8x128xf32>
      tpu.vector_store %arg8[%c0_18, %c0_19], %31 {strides = array<i32>} : memref<8x128xf32, #tpu.memory_space<vmem>>, vector<8x128xf32>,
    } else {
    }
    return
  }
  func.func @transform_1(%arg0: i32, %arg1: i32) -> (i32, i32) {
    %c0_i32 = arith.constant 0 : i32
    %c0_i32_0 = arith.constant 0 : i32
    %c0_i32_1 = arith.constant 0 : i32
    return %c0_i32, %c0_i32_0 : i32, i32
  }
  func.func @transform_2(%arg0: i32, %arg1: i32) -> (i32, i32) {
    %c0_i32 = arith.constant 0 : i32
    %c0_i32_0 = arith.constant 0 : i32
    %c0_i32_1 = arith.constant 0 : i32
    return %c0_i32, %c0_i32_0 : i32, i32
  }
  func.func @transform_3(%arg0: i32, %arg1: i32) -> (i32, i32) {
    %c0_i32 = arith.constant 0 : i32
    %c0_i32_0 = arith.constant 0 : i32
    %c0_i32_1 = arith.constant 0 : i32
    return %c0_i32, %c0_i32_0 : i32, i32
  }
  func.func @transform_4(%arg0: i32, %arg1: i32) -> (i32, i32) {
    %c0_i32 = arith.constant 0 : i32
    %c0_i32_0 = arith.constant 0 : i32
    %c0_i32_1 = arith.constant 0 : i32
    return %c0_i32, %c0_i32_0 : i32, i32
  }
  func.func @transform_5(%arg0: i32, %arg1: i32) -> (i32, i32) {
    %c0_i32 = arith.constant 0 : i32
    %c0_i32_0 = arith.constant 0 : i32
    %c0_i32_1 = arith.constant 0 : i32
    return %c0_i32, %c0_i32_0 : i32, i32
  }
  func.func @transform_6(%arg0: i32, %arg1: i32) -> (i32, i32) {
    %c0_i32 = arith.constant 0 : i32
    %c0_i32_0 = arith.constant 0 : i32
    %c0_i32_1 = arith.constant 0 : i32
    return %c0_i32, %c0_i32_0 : i32, i32
  }
}

</mosaic_0001>

<bundles_post_ra>
// kernel: chebnet_forward.1
= control target key start
LH: loop header
LB: loop body
LE: loop exit
PB: predicated region body
PF: predicated region fallthrough
CT: control target
= control target key end

     0   :  { %s1404_s21 = smov 0   ;;  %s1406_s22 = smov 0   ;;  %s1516_s0 = inlined_call_operand.vmem [shape: f32[128,128], index: 0, kind: input, shape index: {}]   ;;  %s1517_s1 = inlined_call_operand.vmem [shape: f32[8,128], index: 1, kind: input, shape index: {}]   ;;  %s1518_s2 = inlined_call_operand.vmem [shape: f32[16,24], index: 2, kind: input, shape index: {}]   ;;  %s1519_s3 = inlined_call_operand.vmem [shape: f32[16,1], index: 3, kind: input, shape index: {}]   ;;  %s1520_s4 = inlined_call_operand.vmem [shape: f32[8,48], index: 4, kind: input, shape index: {}]   ;;  %s1521_s5 = inlined_call_operand.vmem [shape: f32[8,1], index: 5, kind: input, shape index: {}]   ;;  %s1522_s6 = inlined_call_operand.vmem [shape: f32[8,128], index: 6, kind: output, shape index: {}]  }
   0x1   :  { %s1408_s23 = smov 0  }
   0x2 LB: > { %s28_s24 = sadd.s32 1, %s1352_s22  ;;  %p910_p0 = scmp.ge.s32.totalorder %s1356_s23, 1  ;;  %s1356_s23 = sphi %s1408_s23, %s16_s23   ;;  %s1352_s22 = sphi %s1406_s22, %s1524_s22   ;;  %s1348_s21 = sphi %s1404_s21, %s1523_s21  }
   0x3   : > { %p30_p1 = scmp.ge.s32.totalorder %s28_s24, 4  ;;  %p185_p2 = scmp.lt.s32.totalorder %s1356_s23, 5 }
   0x5   : > { %s1526_s24 = smov (%p30_p1, %s28_s24), 0  ;;  %p186_p3 = pnand %p910_p0, %p185_p2 }
   0x6   : > { %p203_p4 = scmp.eq.s32.totalorder (!%p186_p3), %s1348_s21, 0  ;;  %p911_p5 = scmp.ne.s32.totalorder (!%p186_p3), %s1348_s21, 0 }
   0x7   : > { %189 = sbr.rel (%p186_p3) target bundleno = 1474 (0x5c2), region = 40 }
   0xe   : > { %206 = sbr.rel (%p911_p5) target bundleno = 26 (0x1a), region = 44  ;;  %v239_v0 = vld [vmem:[%s1516_s0] sm:$0xff] (!%p911_p5)  ;;  %v241_v1 = vld [vmem:[%s1516_s0 + $0x8] sm:$0xff] (!%p911_p5)  ;;  %v243_v2 = vld [vmem:[%s1516_s0 + $0x10] sm:$0xff] (!%p911_p5) }
   0xf   : > { %240 = vst [vmem:[#allocation2] sm:$0xff] (!%p911_p5), %v239_v0  ;;  %242 = vst [vmem:[#allocation2 + $0x8] sm:$0xff] (!%p911_p5), %v241_v1  ;;  %v245_v3 = vld [vmem:[%s1516_s0 + $0x18] sm:$0xff] (!%p911_p5)  ;;  %v247_v4 = vld [vmem:[%s1516_s0 + $0x20] sm:$0xff] (!%p911_p5) }
  0x10   : > { %244 = vst [vmem:[#allocation2 + $0x10] sm:$0xff] (!%p911_p5), %v243_v2  ;;  %v249_v5 = vld [vmem:[%s1516_s0 + $0x28] sm:$0xff] (!%p911_p5)  ;;  %246 = vst [vmem:[#allocation2 + $0x18] sm:$0xff] (!%p911_p5), %v245_v3  ;;  %v251_v6 = vld [vmem:[%s1516_s0 + $0x30] sm:$0xff] (!%p911_p5) }
  0x11   : > { %248 = vst [vmem:[#allocation2 + $0x20] sm:$0xff] (!%p911_p5), %v247_v4  ;;  %250 = vst [vmem:[#allocation2 + $0x28] sm:$0xff] (!%p911_p5), %v249_v5  ;;  %v253_v7 = vld [vmem:[%s1516_s0 + $0x38] sm:$0xff] (!%p911_p5)  ;;  %v255_v8 = vld [vmem:[%s1516_s0 + $0x40] sm:$0xff] (!%p911_p5) }
  0x12   : > { %252 = vst [vmem:[#allocation2 + $0x30] sm:$0xff] (!%p911_p5), %v251_v6  ;;  %254 = vst [vmem:[#allocation2 + $0x38] sm:$0xff] (!%p911_p5), %v253_v7  ;;  %v257_v9 = vld [vmem:[%s1516_s0 + $0x48] sm:$0xff] (!%p911_p5)  ;;  %v259_v10 = vld [vmem:[%s1516_s0 + $0x50] sm:$0xff] (!%p911_p5) }
  0x13   : > { %256 = vst [vmem:[#allocation2 + $0x40] sm:$0xff] (!%p911_p5), %v255_v8  ;;  %v261_v11 = vld [vmem:[%s1516_s0 + $0x58] sm:$0xff] (!%p911_p5)  ;;  %258 = vst [vmem:[#allocation2 + $0x48] sm:$0xff] (!%p911_p5), %v257_v9  ;;  %v263_v12 = vld [vmem:[%s1516_s0 + $0x60] sm:$0xff] (!%p911_p5) }
  0x14   : > { %260 = vst [vmem:[#allocation2 + $0x50] sm:$0xff] (!%p911_p5), %v259_v10  ;;  %262 = vst [vmem:[#allocation2 + $0x58] sm:$0xff] (!%p911_p5), %v261_v11  ;;  %v265_v13 = vld [vmem:[%s1516_s0 + $0x68] sm:$0xff] (!%p911_p5)  ;;  %v267_v14 = vld [vmem:[%s1516_s0 + $0x70] sm:$0xff] (!%p911_p5) }
  0x15   : > { %264 = vst [vmem:[#allocation2 + $0x60] sm:$0xff] %v263_v12  ;;  %266 = vst [vmem:[#allocation2 + $0x68] sm:$0xff] %v265_v13  ;;  %v269_v15 = vld [vmem:[%s1516_s0 + $0x78] sm:$0xff] }
  0x16   : > { %268 = vst [vmem:[#allocation2 + $0x70] sm:$0xff] %v267_v14  ;;  %270 = vst [vmem:[#allocation2 + $0x78] sm:$0xff] %v269_v15 }
  0x17   : > { %278 = vsyncadd [#allocation3], 2048 }
  0x18   : > { %1344 = dma.done.wait [#allocation3], 2048 }
  0x19   : > { %1345 = vsyncadd [#allocation3], 4294965248 }
  0x1a PF: > { %286 = sbr.rel (!%p203_p4) target bundleno = 33 (0x21), region = 82  ;;  %v287_v16 = vld [vmem:[%s1517_s1] sm:$0xff] (%p203_p4) }
  0x1b   : > { %288 = vst [vmem:[#allocation4] sm:$0xff] (%p203_p4), %v287_v16 }
  0x21 PF: > { %291 = sbr.rel (%p911_p5) target bundleno = 280 (0x118), region = 86  ;;  %v293_v17 = vld [vmem:[#allocation2] sm:$0xff] (!%p911_p5)  ;;  %v294_v18 = vld [vmem:[#allocation2 + $0x8] sm:$0xff] (!%p911_p5)  ;;  %v295_v19 = vld [vmem:[#allocation2 + $0x10] sm:$0xff] (!%p911_p5)  ;;  %v1358_v20 = vmov (!%p911_p5), 0.0|0.0   ;;  %vm1359_vm0 = vmmov (!%p911_p5), 0  }
  0x22   : > { %1170 = vmatprep.subr.bf16.mxu0 (!%p911_p5), %v1358_v20  ;;  %v1171_v21 = vpack.c.bf16 (!%p911_p5), %v294_v18, %v293_v17  ;;  %v296_v22 = vld [vmem:[#allocation2 + $0x18] sm:$0xff] (!%p911_p5)  ;;  %v1360_v23 = vmov (!%p911_p5), 0.0   ;;  %v297_v25 = vld [vmem:[#allocation2 + $0x20] sm:$0xff] (!%p911_p5)  ;;  %v298_v26 = vld [vmem:[#allocation2 + $0x28] sm:$0xff] (!%p911_p5) }
  0x23   : > { %1038 = vmatprep.mubr.msk.f32.mxu0 (!%p911_p5), %vm1359_vm0, %v1360_v23  ;;  %v1174_v24 = vpack.c.bf16 (!%p911_p5), %v296_v22, %v295_v19  ;;  %v1177_v27 = vpack.c.bf16 (!%p911_p5), %v298_v26, %v297_v25  ;;  %v299_v28 = vld [vmem:[#allocation2 + $0x30] sm:$0xff] (!%p911_p5)  ;;  %v300_v29 = vld [vmem:[#allocation2 + $0x38] sm:$0xff] (!%p911_p5)  ;;  %v301_v31 = vld [vmem:[#allocation2 + $0x40] sm:$0xff] (!%p911_p5) }
  0x24   : > { %1172 = vmatpush3.bf16.msra.mxu0 (!%p911_p5), %v1171_v21  ;;  %v1180_v30 = vpack.c.bf16 (!%p911_p5), %v300_v29, %v299_v28  ;;  %v302_v32 = vld [vmem:[#allocation2 + $0x48] sm:$0xff] (!%p911_p5)  ;;  %v303_v34 = vld [vmem:[#allocation2 + $0x50] sm:$0xff] (!%p911_p5)  ;;  %v304_v35 = vld [vmem:[#allocation2 + $0x58] sm:$0xff] (!%p911_p5) }
  0x25   : > { %1173 = vmatprep.subr.bf16.mxu0 (!%p911_p5), %v1358_v20  ;;  %v1183_v33 = vpack.c.bf16 (!%p911_p5), %v302_v32, %v301_v31  ;;  %v1186_v36 = vpack.c.bf16 (!%p911_p5), %v304_v35, %v303_v34  ;;  %v305_v37 = vld [vmem:[#allocation2 + $0x60] sm:$0xff] (!%p911_p5)  ;;  %v306_v38 = vld [vmem:[#allocation2 + $0x68] sm:$0xff] (!%p911_p5)  ;;  %v307_v40 = vld [vmem:[#allocation2 + $0x70] sm:$0xff] (!%p911_p5) }
  0x26   : > { %v1189_v39 = vpack.c.bf16 (!%p911_p5), %v306_v38, %v305_v37  ;;  %v308_v41 = vld [vmem:[#allocation2 + $0x78] sm:$0xff] (!%p911_p5)  ;;  %v292_v43 = vld [vmem:[#allocation4] sm:$0xff] (!%p911_p5) }
  0x27   : > { %v1192_v42 = vpack.c.bf16 (!%p911_p5), %v308_v41, %v307_v40 }
  0x28   : > { %1175 = vmatpush3.bf16.msra.mxu0 %v1174_v24 }
  0x29   : > { %1176 = vmatprep.subr.bf16.mxu0 %v1358_v20 }
  0x2c   : > { %1178 = vmatpush3.bf16.msra.mxu0 %v1177_v27 }
  0x2d   : > { %1179 = vmatprep.subr.bf16.mxu0 %v1358_v20 }
  0x30   : > { %1181 = vmatpush3.bf16.msra.mxu0 %v1180_v30 }
  0x31   : > { %1182 = vmatprep.subr.bf16.mxu0 %v1358_v20 }
  0x34   : > { %1184 = vmatpush3.bf16.msra.mxu0 %v1183_v33 }
  0x35   : > { %1185 = vmatprep.subr.bf16.mxu0 %v1358_v20 }
  0x38   : > { %1187 = vmatpush3.bf16.msra.mxu0 %v1186_v36 }
  0x39   : > { %1188 = vmatprep.subr.bf16.mxu0 %v1358_v20 }
  0x3c   : > { %1190 = vmatpush3.bf16.msra.mxu0 %v1189_v39 }
  0x3d   : > { %1191 = vmatprep.subr.bf16.mxu0 %v1358_v20 }
  0x40   : > { %1193 = vmatpush3.bf16.msra.mxu0 %v1192_v42 }
  0x43   : > { %1039 = vmatmul.mubr.f32.vlgmr.msra.gmra.mrb[0].mxu0 %v292_v43 }
 0x116   : > { %v375_v44 = vpop.f32.mrb[0].mxu0 }
 0x117   : > { %379 = vst [vmem:[#allocation4 + $0x8] sm:$0xff] %v375_v44  ;;  %v1040_v45 = vpop.f32.mrb[1].mxu0 }
 0x118 PF: > { %p914_p6 = scmp.ne.s32.totalorder %s1348_s21, 1 }
 0x119   : > { %v385_v46 = vld [vmem:[#allocation2] sm:$0xff] (!%p914_p6)  ;;  %v386_v47 = vld [vmem:[#allocation2 + $0x8] sm:$0xff] (!%p914_p6)  ;;  %v387_v48 = vld [vmem:[#allocation2 + $0x10] sm:$0xff] (!%p914_p6)  ;;  %v1361_v49 = vmov (!%p914_p6), 0.0|0.0   ;;  %vm1362_vm1 = vmmov (!%p914_p6), 0   ;;  %v1363_v52 = vmov (!%p914_p6), 0.0  }
 0x11a   : > { %383 = sbr.rel (%p914_p6) target bundleno = 751 (0x2ef), region = 90  ;;  %1194 = vmatprep.subr.bf16.mxu0 (!%p914_p6), %v1361_v49  ;;  %v1195_v50 = vpack.c.bf16 (!%p914_p6), %v386_v47, %v385_v46  ;;  %v388_v51 = vld [vmem:[#allocation2 + $0x18] sm:$0xff] (!%p914_p6)  ;;  %1073 = vmatprep.mubr.msk.f32.mxu0 (!%p914_p6), %vm1362_vm1, %v1363_v52  ;;  %v389_v54 = vld [vmem:[#allocation2 + $0x20] sm:$0xff] (!%p914_p6)  ;;  %v390_v55 = vld [vmem:[#allocation2 + $0x28] sm:$0xff] (!%p914_p6)  ;;  %vm492_vm2 = vcmask (!%p914_p6), 195584   ;;  %v1364_v13 = vmov (!%p914_p6), 0  }
 0x11b   : > { %v1198_v53 = vpack.c.bf16 (!%p914_p6), %v388_v51, %v387_v48  ;;  %v1201_v56 = vpack.c.bf16 (!%p914_p6), %v390_v55, %v389_v54  ;;  %v391_v57 = vld [vmem:[#allocation2 + $0x30] sm:$0xff] (!%p914_p6)  ;;  %v392_v58 = vld [vmem:[#allocation2 + $0x38] sm:$0xff] (!%p914_p6)  ;;  %v393_v60 = vld [vmem:[#allocation2 + $0x40] sm:$0xff] (!%p914_p6)  ;;  %1330 = vset.pattern.permute.xlu0 (!%p914_p6), %v1364_v13 }
 0x11c   : > { %1196 = vmatpush3.bf16.msra.mxu0 (!%p914_p6), %v1195_v50  ;;  %v1204_v59 = vpack.c.bf16 (!%p914_p6), %v392_v58, %v391_v57  ;;  %v394_v61 = vld [vmem:[#allocation2 + $0x48] sm:$0xff] (!%p914_p6)  ;;  %v395_v63 = vld [vmem:[#allocation2 + $0x50] sm:$0xff] (!%p914_p6)  ;;  %v396_v0 = vld [vmem:[#allocation2 + $0x58] sm:$0xff] (!%p914_p6) }
 0x11d   : > { %1197 = vmatprep.subr.bf16.mxu0 (!%p914_p6), %v1361_v49  ;;  %v1207_v62 = vpack.c.bf16 (!%p914_p6), %v394_v61, %v393_v60  ;;  %v1210_v1 = vpack.c.bf16 (!%p914_p6), %v396_v0, %v395_v63  ;;  %v397_v2 = vld [vmem:[#allocation2 + $0x60] sm:$0xff] (!%p914_p6)  ;;  %v398_v3 = vld [vmem:[#allocation2 + $0x68] sm:$0xff] (!%p914_p6)  ;;  %v399_v5 = vld [vmem:[#allocation2 + $0x70] sm:$0xff] (!%p914_p6) }
 0x11e   : > { %v1213_v4 = vpack.c.bf16 (!%p914_p6), %v398_v3, %v397_v2  ;;  %v400_v6 = vld [vmem:[#allocation2 + $0x78] sm:$0xff] (!%p914_p6)  ;;  %v384_v8 = vld [vmem:[#allocation4 + $0x8] sm:$0xff] (!%p914_p6)  ;;  %v472_v9 = vld [vmem:[#allocation4] sm:$0xff] (!%p914_p6) }
 0x11f   : > { %v1216_v7 = vpack.c.bf16 (!%p914_p6), %v400_v6, %v399_v5  ;;  %v1218_v10 = vpack.c.bf16 (!%p914_p6), %v384_v8, %v472_v9  ;;  %v475_v11 = vld [vmem:[%s1518_s2] sm:$0xff] (!%p914_p6)  ;;  %v481_v14 = vld [vmem:[%s1519_s3 + $0x8] sm:$0xff] (!%p914_p6) }
 0x120   : > { %1199 = vmatpush3.bf16.msra.mxu0 (!%p914_p6), %v1198_v53  ;;  %1082 = vmatprep.mubr.msk.f32.mxu1 (!%p914_p6), %vm492_vm2, %v475_v11  ;;  %v480_v12 = vld [vmem:[%s1519_s3] sm:$0xff] (!%p914_p6)  ;;  %v476_v19 = vld [vmem:[%s1518_s2 + $0x8] sm:$0xff] (!%p914_p6) }
 0x121   : > { %1200 = vmatprep.subr.bf16.mxu0 %v1361_v49  ;;  %1219 = vmatprep.subr.bf16.mxu1 %v1218_v10 }
 0x122   : > { %1221 = vmatpush3.bf16.msra.mxu1 %v1218_v10  ;;  %484 = vperm.xlu0 %1330, %v480_v12  }
 0x124   : > { %1202 = vmatpush3.bf16.msra.mxu0 %v1201_v56 }
 0x125   : > { %1203 = vmatprep.subr.bf16.mxu0 %v1361_v49 }
 0x126   : > { %489 = vperm.xlu0 %1330, %v481_v14  }
 0x128   : > { %1205 = vmatpush3.bf16.msra.mxu0 %v1204_v59 }
 0x129   : > { %1206 = vmatprep.subr.bf16.mxu0 %v1361_v49 }
 0x12c   : > { %1208 = vmatpush3.bf16.msra.mxu0 %v1207_v62 }
 0x12d   : > { %1209 = vmatprep.subr.bf16.mxu0 %v1361_v49 }
 0x130   : > { %1211 = vmatpush3.bf16.msra.mxu0 %v1210_v1 }
 0x131   : > { %1212 = vmatprep.subr.bf16.mxu0 %v1361_v49 }
 0x134   : > { %1214 = vmatpush3.bf16.msra.mxu0 %v1213_v4 }
 0x135   : > { %1215 = vmatprep.subr.bf16.mxu0 %v1361_v49 }
 0x138   : > { %1217 = vmatpush3.bf16.msra.mxu0 %v1216_v7 }
 0x13b   : > { %1074 = vmatmul.mubr.f32.vlgmr.msra.gmra.mrb[0].mxu0 %v384_v8 }
 0x1a1   : > { %v485_v20 = vpop.permute.xlu0 %484 }
 0x1a5   : > { %v490_v21 = vpop.permute.xlu0 %489 }
 0x20e   : > { %v467_v15 = vpop.f32.mrb[0].mxu0 }
 0x20f   : > { %v471_v16 = vmul.f32 2.0, %v467_v15  ;;  %v1075_v17 = vpop.f32.mrb[1].mxu0 }
 0x211   : > { %v473_v18 = vsub.f32 %v471_v16, %v472_v9 }
 0x213   : > { %1080 = vmatprep.subr.mxu1 %v473_v18 }
 0x214   : > { %1081 = vmatpush3.msra.mxu1 %v473_v18 }
 0x215   : > { %1083 = vmatmul.mubr.msk.f32.vlgmr.msra.gmra.mrb[0].mxu1 %vm492_vm2, %v476_v19 }
 0x2e8   : > { %v1084_v22 = vpop.f32.mrb[0].mxu1 }
 0x2e9   : > { %v571_v23 = vadd.f32 %v1084_v22, %v490_v21  ;;  %v565_v24 = vpop.f32.mrb[1].mxu1 }
 0x2ea   : > { %v566_v25 = vadd.f32 %v565_v24, %v485_v20 }
 0x2eb   : > { %v575_v26 = vmax.f32 %v571_v23, 0.0 }
 0x2ec   : > { %v574_v27 = vmax.f32 %v566_v25, 0.0 }
 0x2ed   : > { %577 = vst [vmem:[#allocation5 + $0x8] sm:$0xff] %v575_v26 }
 0x2ee   : > { %576 = vst [vmem:[#allocation5] sm:$0xff] %v574_v27 }
 0x2ef PF: > { %p917_p7 = scmp.ne.s32.totalorder %s1348_s21, 2 }
 0x2f0   : > { %v584_v28 = vld [vmem:[#allocation2] sm:$0xff] (!%p917_p7)  ;;  %v585_v29 = vld [vmem:[#allocation2 + $0x8] sm:$0xff] (!%p917_p7)  ;;  %v586_v30 = vld [vmem:[#allocation2 + $0x10] sm:$0xff] (!%p917_p7) }
 0x2f1   : > { %581 = sbr.rel (%p917_p7) target bundleno = 1001 (0x3e9), region = 94  ;;  %v1222_v31 = vpack.c.bf16 (!%p917_p7), %v585_v29, %v584_v28  ;;  %v587_v32 = vld [vmem:[#allocation2 + $0x18] sm:$0xff] (!%p917_p7)  ;;  %v588_v34 = vld [vmem:[#allocation2 + $0x20] sm:$0xff] (!%p917_p7)  ;;  %v589_v35 = vld [vmem:[#allocation2 + $0x28] sm:$0xff] (!%p917_p7) }
 0x2f2   : > { %v1226_v33 = vpack.c.bf16 (!%p917_p7), %v587_v32, %v586_v30  ;;  %v1230_v36 = vpack.c.bf16 (!%p917_p7), %v589_v35, %v588_v34  ;;  %v590_v38 = vld [vmem:[#allocation2 + $0x30] sm:$0xff] (!%p917_p7)  ;;  %v591_v39 = vld [vmem:[#allocation2 + $0x38] sm:$0xff] (!%p917_p7)  ;;  %v592_v41 = vld [vmem:[#allocation2 + $0x40] sm:$0xff] (!%p917_p7) }
 0x2f3   : > { %1223 = vmatprep.subr.bf16.mxu0 (!%p917_p7), %v1222_v31  ;;  %v1234_v40 = vpack.c.bf16 (!%p917_p7), %v591_v39, %v590_v38  ;;  %v593_v42 = vld [vmem:[#allocation2 + $0x48] sm:$0xff] (!%p917_p7)  ;;  %v594_v44 = vld [vmem:[#allocation2 + $0x50] sm:$0xff] (!%p917_p7)  ;;  %v595_v45 = vld [vmem:[#allocation2 + $0x58] sm:$0xff] (!%p917_p7) }
 0x2f4   : > { %1225 = vmatpush3.bf16.msra.mxu0 (!%p917_p7), %v1222_v31  ;;  %v1238_v43 = vpack.c.bf16 (!%p917_p7), %v593_v42, %v592_v41  ;;  %v1242_v46 = vpack.c.bf16 (!%p917_p7), %v595_v45, %v594_v44  ;;  %v596_v47 = vld [vmem:[#allocation2 + $0x60] sm:$0xff] (!%p917_p7)  ;;  %v597_v48 = vld [vmem:[#allocation2 + $0x68] sm:$0xff] (!%p917_p7)  ;;  %v598_v50 = vld [vmem:[#allocation2 + $0x70] sm:$0xff] (!%p917_p7) }
 0x2f5   : > { %1227 = vmatprep.subr.bf16.mxu0 (!%p917_p7), %v1226_v33  ;;  %v582_v37 = vld [vmem:[#allocation5] sm:$0xff] (!%p917_p7)  ;;  %v1246_v49 = vpack.c.bf16 (!%p917_p7), %v597_v48, %v596_v47  ;;  %v583_v53 = vld [vmem:[#allocation5 + $0x8] sm:$0xff] (!%p917_p7) }
 0x2f6   : > { %1117 = vmatprep.mubr.f32.mxu0 (!%p917_p7), %v582_v37  ;;  %v599_v51 = vld [vmem:[#allocation2 + $0x78] sm:$0xff] (!%p917_p7) }
 0x2f7   : > { %v1250_v52 = vpack.c.bf16 (!%p917_p7), %v599_v51, %v598_v50 }
 0x2f8   : > { %1229 = vmatpush3.bf16.msra.mxu0 %v1226_v33 }
 0x2f9   : > { %1231 = vmatprep.subr.bf16.mxu0 %v1230_v36 }
 0x2fc   : > { %1233 = vmatpush3.bf16.msra.mxu0 %v1230_v36 }
 0x2fd   : > { %1235 = vmatprep.subr.bf16.mxu0 %v1234_v40 }
 0x300   : > { %1237 = vmatpush3.bf16.msra.mxu0 %v1234_v40 }
 0x301   : > { %1239 = vmatprep.subr.bf16.mxu0 %v1238_v43 }
 0x304   : > { %1241 = vmatpush3.bf16.msra.mxu0 %v1238_v43 }
 0x305   : > { %1243 = vmatprep.subr.bf16.mxu0 %v1242_v46 }
 0x308   : > { %1245 = vmatpush3.bf16.msra.mxu0 %v1242_v46 }
 0x309   : > { %1247 = vmatprep.subr.bf16.mxu0 %v1246_v49 }
 0x30c   : > { %1249 = vmatpush3.bf16.msra.mxu0 %v1246_v49 }
 0x30d   : > { %1251 = vmatprep.subr.bf16.mxu0 %v1250_v52 }
 0x310   : > { %1253 = vmatpush3.bf16.msra.mxu0 %v1250_v52 }
 0x313   : > { %1118 = vmatmul.mubr.f32.vlgmr.msra.gmra.mrb[0].mxu0 %v583_v53 }
 0x3e6   : > { %v1119_v54 = vpop.f32.mrb[0].mxu0 }
 0x3e7   : > { %676 = vst [vmem:[#allocation5 + $0x18] sm:$0xff] %v1119_v54  ;;  %v666_v55 = vpop.f32.mrb[1].mxu0 }
 0x3e8   : > { %675 = vst [vmem:[#allocation5 + $0x10] sm:$0xff] %v666_v55 }
 0x3e9 PF: > { %p918_p8 = scmp.ne.s32.totalorder %s1348_s21, 3 }
 0x3ea   : > { %v683_v56 = vld [vmem:[#allocation2] sm:$0xff] (!%p918_p8)  ;;  %v684_v57 = vld [vmem:[#allocation2 + $0x8] sm:$0xff] (!%p918_p8)  ;;  %v685_v58 = vld [vmem:[#allocation2 + $0x10] sm:$0xff] (!%p918_p8)  ;;  %v1365_v21 = vmov (!%p918_p8), 0.0|0.0   ;;  %vm1366_vm3 = vmmov (!%p918_p8), 0   ;;  %v1367_v23 = vmov (!%p918_p8), 0.0  }
 0x3eb   : > { %680 = sbr.rel (%p918_p8) target bundleno = 1474 (0x5c2), region = 98  ;;  %v1254_v59 = vpack.c.bf16 (!%p918_p8), %v684_v57, %v683_v56  ;;  %v686_v60 = vld [vmem:[#allocation2 + $0x18] sm:$0xff] (!%p918_p8)  ;;  %v687_v62 = vld [vmem:[#allocation2 + $0x20] sm:$0xff] (!%p918_p8)  ;;  %v688_v63 = vld [vmem:[#allocation2 + $0x28] sm:$0xff] (!%p918_p8)  ;;  %1286 = vmatprep.subr.bf16.mxu1 (!%p918_p8), %v1365_v21  ;;  %1167 = vmatprep.mubr.msk.f32.mxu1 (!%p918_p8), %vm1366_vm3, %v1367_v23  ;;  %v1368_v25 = vmov (!%p918_p8), 0   ;;  %vm795_vm4 = vcmask (!%p918_p8), 392192  }
 0x3ec   : > { %v1258_v61 = vpack.c.bf16 (!%p918_p8), %v686_v60, %v685_v58  ;;  %v1262_v0 = vpack.c.bf16 (!%p918_p8), %v688_v63, %v687_v62  ;;  %v689_v2 = vld [vmem:[#allocation2 + $0x30] sm:$0xff] (!%p918_p8)  ;;  %v690_v3 = vld [vmem:[#allocation2 + $0x38] sm:$0xff] (!%p918_p8)  ;;  %v691_v5 = vld [vmem:[#allocation2 + $0x40] sm:$0xff] (!%p918_p8)  ;;  %1331 = vset.pattern.permute.xlu0 (!%p918_p8), %v1368_v25 }
 0x3ed   : > { %1255 = vmatprep.subr.bf16.mxu0 (!%p918_p8), %v1254_v59  ;;  %v1266_v4 = vpack.c.bf16 (!%p918_p8), %v690_v3, %v689_v2  ;;  %v692_v6 = vld [vmem:[#allocation2 + $0x48] sm:$0xff] (!%p918_p8)  ;;  %v693_v8 = vld [vmem:[#allocation2 + $0x50] sm:$0xff] (!%p918_p8)  ;;  %v694_v9 = vld [vmem:[#allocation2 + $0x58] sm:$0xff] (!%p918_p8) }
 0x3ee   : > { %1257 = vmatpush3.bf16.msra.mxu0 (!%p918_p8), %v1254_v59  ;;  %v1270_v7 = vpack.c.bf16 (!%p918_p8), %v692_v6, %v691_v5  ;;  %v1274_v10 = vpack.c.bf16 (!%p918_p8), %v694_v9, %v693_v8  ;;  %v695_v11 = vld [vmem:[#allocation2 + $0x60] sm:$0xff] (!%p918_p8)  ;;  %v696_v12 = vld [vmem:[#allocation2 + $0x68] sm:$0xff] (!%p918_p8)  ;;  %v697_v14 = vld [vmem:[#allocation2 + $0x70] sm:$0xff] (!%p918_p8) }
 0x3ef   : > { %1259 = vmatprep.subr.bf16.mxu0 (!%p918_p8), %v1258_v61  ;;  %v681_v1 = vld [vmem:[#allocation5 + $0x10] sm:$0xff] (!%p918_p8)  ;;  %v1278_v13 = vpack.c.bf16 (!%p918_p8), %v696_v12, %v695_v11  ;;  %v698_v15 = vld [vmem:[#allocation2 + $0x78] sm:$0xff] (!%p918_p8)  ;;  %v682_v17 = vld [vmem:[#allocation5 + $0x18] sm:$0xff] (!%p918_p8) }
 0x3f0   : > { %1152 = vmatprep.mubr.f32.mxu0 (!%p918_p8), %v681_v1  ;;  %v1282_v16 = vpack.c.bf16 (!%p918_p8), %v698_v15, %v697_v14  ;;  %v777_v18 = vld [vmem:[#allocation5 + $0x8] sm:$0xff] (!%p918_p8)  ;;  %v776_v19 = vld [vmem:[#allocation5] sm:$0xff] (!%p918_p8)  ;;  %v1290_v22 = vpack.c.bf16 (!%p918_p8), %v682_v17, %v681_v1 }
 0x3f1   : > { %v1287_v20 = vpack.c.bf16 (!%p918_p8), %v777_v18, %v776_v19  ;;  %v789_v24 = vld [vmem:[%s1521_s5] sm:$0xff] (!%p918_p8) }
 0x3f2   : > { %1261 = vmatpush3.bf16.msra.mxu0 %v1258_v61  ;;  %792 = vperm.xlu0 %1331, %v789_v24   ;;  %v782_v33 = vld [vmem:[%s1520_s4] sm:$0xff] }
 0x3f3   : > { %1263 = vmatprep.subr.bf16.mxu0 %v1262_v0  ;;  %1288 = vmatpush3.bf16.msra.mxu1 %v1287_v20 }
 0x3f4   : > { %1289 = vmatprep.subr.bf16.mxu1 %v1365_v21 }
 0x3f6   : > { %1265 = vmatpush3.bf16.msra.mxu0 %v1262_v0 }
 0x3f7   : > { %1267 = vmatprep.subr.bf16.mxu0 %v1266_v4  ;;  %1291 = vmatpush3.bf16.msra.mxu1 %v1290_v22 }
 0x3f8   : > { %1292 = vmatprep.subr.bf16.mxu1 %v1365_v21 }
 0x3fa   : > { %1269 = vmatpush3.bf16.msra.mxu0 %v1266_v4 }
 0x3fb   : > { %1271 = vmatprep.subr.bf16.mxu0 %v1270_v7 }
 0x3fe   : > { %1273 = vmatpush3.bf16.msra.mxu0 %v1270_v7 }
 0x3ff   : > { %1275 = vmatprep.subr.bf16.mxu0 %v1274_v10 }
 0x402   : > { %1277 = vmatpush3.bf16.msra.mxu0 %v1274_v10 }
 0x403   : > { %1279 = vmatprep.subr.bf16.mxu0 %v1278_v13 }
 0x406   : > { %1281 = vmatpush3.bf16.msra.mxu0 %v1278_v13 }
 0x407   : > { %1283 = vmatprep.subr.bf16.mxu0 %v1282_v16 }
 0x40a   : > { %1285 = vmatpush3.bf16.msra.mxu0 %v1282_v16 }
 0x40d   : > { %1153 = vmatmul.mubr.f32.vlgmr.msra.gmra.mrb[0].mxu0 %v682_v17 }
 0x471   : > { %v793_v34 = vpop.permute.xlu0 %792 }
 0x4e0   : > { %v1154_v26 = vpop.f32.mrb[0].mxu0 }
 0x4e1   : > { %v775_v27 = vmul.f32 2.0, %v1154_v26  ;;  %v765_v28 = vpop.f32.mrb[1].mxu0 }
 0x4e2   : > { %v774_v29 = vmul.f32 2.0, %v765_v28 }
 0x4e3   : > { %v779_v30 = vsub.f32 %v775_v27, %v777_v18 }
 0x4e4   : > { %v778_v31 = vsub.f32 %v774_v29, %v776_v19 }
 0x4e6   : > { %v1293_v32 = vpack.c.bf16 %v779_v30, %v778_v31 }
 0x4e8   : > { %1294 = vmatpush3.bf16.msra.mxu1 %v1293_v32 }
 0x4eb   : > { %1168 = vmatmul.mubr.msk.f32.vlgmr.msra.gmra.mrb[0].mxu1 %vm795_vm4, %v782_v33 }
 0x5be   : > { %v865_v35 = vpop.f32.mrb[0].mxu1 }
 0x5bf   : > { %v866_v36 = vadd.f32 %v865_v35, %v793_v34  ;;  %v1169_v37 = vpop.f32.mrb[1].mxu1 }
 0x5c1   : > { %869 = vst [vmem:[%s1522_s6] sm:$0xff] %v866_v36 }
 0x5c2 PF: > { %s16_s23 = sadd.s32 1, %s1356_s23   ;;  %s1523_s21 = smov %s1352_s22 }
 0x5c3   : > { %p13_p9 = scmp.ge.s32.totalorder %s16_s23, 6   ;;  %s1524_s22 = smov %s1526_s24 }
 0x5c5   :  { %15 = sbr.rel (!%p13_p9) target bundleno = 2 (0x2), region = 129 }
 0x5cc   :  { %881 = vsyncmov [#allocation3] }
 0x5cf   :  { %s882_s8 = vpop.sfrf %881 }
 0x5d0   :  { %p922_p10 = scmp.ne.s32.totalorder %s882_s8, 0 }
 0x5d2   :  { %886 = shalt.err (%p922_p10)  }

</bundles_post_ra>
